<compile_context>
chip_gen: v7x
topology: tpu7x:2x2x1
jax: 0.10.0
libtpu: 0.0.40
codegen_flags: <defaults>
</compile_context>

<pallas_src>
import functools
import math

import jax
import jax.numpy as jnp
from jax.experimental import pallas as pl
from jax.experimental.pallas import tpu as pltpu


# ------------------------------ fused kernel ---------------------------------


def _encoder_block_kernel(x_ref, bias_ref,
                          wqkv_ref, bqkv_ref, wo_ref, bo_ref,
                          w1_ref, b1_ref, w2_ref, b2_ref,
                          o_ref, *, num_heads, d_k, matmul_dtype):
    """Whole (batch-folded) forward in a single grid step.

    x_ref    : (R, D)    f32, R = B*S (batch folded into rows)
    bias_ref : (R, R)    f32 additive attention bias (user mask + batch isolation)
    wqkv_ref : (D, 3*D)  matmul_dtype, columns packed head-major [q_h | k_h | v_h]
    wo_ref   : (H, d_k, D) matmul_dtype, wo_ref[h] = Wo[h*d_k:(h+1)*d_k, :]
    """
    f32 = jnp.float32
    cast = lambda t: t.astype(matmul_dtype)

    x = x_ref[...]                                                     # (R, D) f32

    # ---- fused QKV projection: ONE MXU matmul, N = 3*D output columns -------
    qkv = jnp.dot(cast(x), wqkv_ref[...],
                  preferred_element_type=f32) + bqkv_ref[...]          # (R, 3D) f32

    # ---- per-head split: static lane slices stacked on a leading batch dim --
    per_head = jnp.stack(
        [qkv[:, h * 3 * d_k:(h + 1) * 3 * d_k] for h in range(num_heads)],
        axis=0)                                                        # (H, R, 3*d_k)
    qh = per_head[:, :, :d_k]                                          # (H, R, d_k)
    kh = per_head[:, :, d_k:2 * d_k]
    vh = per_head[:, :, 2 * d_k:]

    # ---- attention scores + additive mask (f32) ------------------------------
    scale = f32(1.0 / math.sqrt(d_k))
    scores = jnp.einsum("hqd,hkd->hqk", cast(qh), cast(kh),
                        preferred_element_type=f32) * scale            # (H, R, R)
    scores = scores + bias_ref[...][None]                              # broadcast add

    # ---- softmax (f32, exact normalisation) ----------------------------------
    scores = scores - jnp.max(scores, axis=-1, keepdims=True)
    p = jnp.exp(scores)
    p = p / jnp.sum(p, axis=-1, keepdims=True)

    ctx = jnp.einsum("hqk,hkd->hqd", cast(p), cast(vh),
                     preferred_element_type=f32)                       # (H, R, d_k)

    # ---- output projection + residual #1 -------------------------------------
    # concat_h(ctx_h) @ Wo  ==  sum_h ctx_h @ Wo[h*d_k:(h+1)*d_k, :]
    proj = jnp.einsum("hrd,hde->hre", cast(ctx), wo_ref[...],
                      preferred_element_type=f32)                      # (H, R, D)
    attn = jnp.sum(proj, axis=0) + bo_ref[...] + x                     # (R, D) f32

    # ---- position-wise FFN + residual #2 --------------------------------------
    h1 = jnp.dot(cast(attn), w1_ref[...], preferred_element_type=f32) + b1_ref[...]
    h1 = jnp.maximum(h1, 0.0)                                          # ReLU (f32)
    y = jnp.dot(cast(h1), w2_ref[...], preferred_element_type=f32) + b2_ref[...]
    o_ref[...] = (y + attn).astype(o_ref.dtype)


# --------------------------------- wrapper ------------------------------------


def _full(shape):
    nd = len(shape)
    return pl.BlockSpec(shape, lambda i: (0,) * nd)


def encoder_block_forward(src, src_mask, params, *, num_heads,
                          matmul_dtype=jnp.bfloat16):
    """src: [B, S, D] float32, src_mask: [B, 1, S, S] (0 = masked-out key)."""
    B, S, D = src.shape
    assert D % num_heads == 0
    d_k = D // num_heads
    d_ff = params["w1"].shape[-1]
    R = B * S

    # ---- one-time wrapper-side packing (plain XLA ops, never inside kernel) --
    def head_cols(w):                         # (D, D) -> (D, H, d_k)
        return w.reshape(D, num_heads, d_k)

    def head_bias(b):                         # (1, D) -> (H, d_k)
        return b.reshape(num_heads, d_k)

    wqkv = jnp.concatenate([head_cols(params["wq"]), head_cols(params["wk"]),
                            head_cols(params["wv"])], axis=-1)        # (D, H, 3*d_k)
    wqkv = wqkv.reshape(D, 3 * D).astype(matmul_dtype)
    bqkv = jnp.concatenate([head_bias(params["bq"]), head_bias(params["bk"]),
                            head_bias(params["bv"])], axis=-1).reshape(1, 3 * D)
    wo_h = params["wo"].reshape(num_heads, d_k, D).astype(matmul_dtype)
    w1 = params["w1"].astype(matmul_dtype)
    w2 = params["w2"].astype(matmul_dtype)

    # Additive attention bias: user mask (0 -> -1e9) on the batch block-diagonal,
    # -1e9 on cross-batch blocks (isolates the batches folded into the rows).
    # NOTE: a fully-masked query row is a documented degenerate case (uniform
    # attention) in the PyTorch module too.
    user_bias = jnp.where(src_mask[:, 0] != 0, 0.0, -1e9).astype(jnp.float32)  # (B,S,S)
    same_batch = jnp.eye(B, dtype=bool)[:, None, :, None]                      # (B,1,B,1)
    bias = jnp.where(same_batch, user_bias[:, :, None, :],
                     jnp.float32(-1e9)).reshape(R, R)                          # (R, R)

    x2 = src.reshape(R, D)

    kernel = functools.partial(_encoder_block_kernel, num_heads=num_heads,
                               d_k=d_k, matmul_dtype=matmul_dtype)

    out = pl.pallas_call(
        kernel,
        out_shape=jax.ShapeDtypeStruct((R, D), src.dtype),
        grid=(1,),                            # single fused step (see header)
        in_specs=[
            _full((R, D)),                    # x (batch folded into rows)
            _full((R, R)),                    # additive attention bias (f32)
            _full((D, 3 * D)),                # fused QKV weight   (matmul_dtype)
            _full((1, 3 * D)),                # fused QKV bias     (f32)
            _full((num_heads, d_k, D)),       # per-head Wo        (matmul_dtype)
            _full((1, D)),                    # bo                 (f32)
            _full((D, d_ff)), _full((1, d_ff)),   # W1, b1
            _full((d_ff, D)), _full((1, D)),      # W2, b2
        ],
        out_specs=_full((R, D)),
        compiler_params=pltpu.CompilerParams(
            dimension_semantics=("arbitrary",)),
    )(x2, bias, wqkv, bqkv, wo_h, params["bo"], w1, params["b1"], w2, params["b2"])
    return out.reshape(B, S, D)


# --------------------------- pure-JAX reference --------------------------------


def encoder_block_reference(src, src_mask, params, *, num_heads, matmul_dtype=None):
    """f32 spec reference; matmul_dtype=bf16 mirrors the kernel's MXU recipe."""
    B, S, D = src.shape
    d_k = D // num_heads

    def cast(t):
        return t.astype(matmul_dtype) if matmul_dtype is not None else t

    def linear(x, w, bias):
        return jnp.matmul(cast(x), cast(w),
                          preferred_element_type=jnp.float32) + bias[0]

    q = linear(src, params["wq"], params["bq"])
    k = linear(src, params["wk"], params["bk"])
    v = linear(src, params["wv"], params["bv"])

    def split(t):  # (B,S,D) -> (B,H,S,d_k)
        return t.reshape(B, S, num_heads, d_k).transpose(0, 2, 1, 3)

    qh, kh, vh = split(q), split(k), split(v)
    scores = jnp.einsum("bhqd,bhkd->bhqk", cast(qh), cast(kh),
                        preferred_element_type=jnp.float32) / math.sqrt(d_k)
    scores = jnp.where(src_mask != 0, scores, jnp.float32(-1e9))   # masked_fill
    scores = scores - scores.max(axis=-1, keepdims=True)
    p = jnp.exp(scores)
    p = p / p.sum(axis=-1, keepdims=True)
    ctx = jnp.einsum("bhqk,bhkd->bhqd", cast(p), cast(vh),
                     preferred_element_type=jnp.float32)
    ctx = ctx.transpose(0, 2, 1, 3).reshape(B, S, D)
    attn = linear(ctx, params["wo"], params["bo"]) + src

    h = jnp.maximum(linear(attn, params["w1"], params["b1"]), 0.0)
    return linear(h, params["w2"], params["b2"]) + attn


# ------------------------------------ main -------------------------------------


if __name__ == "__main__":
    B, S, D, H, D_FF = 2, 8, 32, 4, 64

    key = jax.random.PRNGKey(0)
    keys = jax.random.split(key, 16)

    def init_w(k, shape, fan_in):
        return jax.random.normal(k, shape, jnp.float32) / math.sqrt(fan_in)

    params = {
        "wq": init_w(keys[0], (D, D), D), "bq": init_w(keys[1], (1, D), D),
        "wk": init_w(keys[2], (D, D), D), "bk": init_w(keys[3], (1, D), D),
        "wv": init_w(keys[4], (D, D), D), "bv": init_w(keys[5], (1, D), D),
        "wo": init_w(keys[6], (D, D), D), "bo": init_w(keys[7], (1, D), D),
        "w1": init_w(keys[8], (D, D_FF), D), "b1": init_w(keys[9], (1, D_FF), D),
        "w2": init_w(keys[10], (D_FF, D), D_FF), "b2": init_w(keys[11], (1, D), D_FF),
    }

    src = jax.random.normal(keys[12], (B, S, D), jnp.float32)
    # Padding-style mask: last two key positions of batch 1 are masked out.
    key_valid = jnp.ones((B, S), jnp.int32).at[1, -2:].set(0)
    src_mask = key_valid[:, None, None, :] * jnp.ones((B, 1, S, S), jnp.int32)

    fwd = jax.jit(functools.partial(encoder_block_forward, num_heads=H))
    out = jax.block_until_ready(fwd(src, src_mask, params))
    assert out.shape == (B, S, D)

    # (1) Exactness: reference using the SAME bf16-operand / f32-accumulation
    #     recipe as the kernel -> agreement up to accumulation-order noise.
    ref_bf16 = encoder_block_reference(src, src_mask, params, num_heads=H,
                                       matmul_dtype=jnp.bfloat16)
    assert jnp.allclose(out, ref_bf16, atol=1e-2, rtol=1e-2), \
        "kernel mismatch vs bf16-matched reference"

    # (2) Fidelity to the f32 PyTorch spec: the slack here is purely the bf16
    #     quantisation of matmul operands (pass matmul_dtype=jnp.float32 to
    #     encoder_block_forward to recover <1e-5 agreement).
    ref_f32 = encoder_block_reference(src, src_mask, params, num_heads=H)
    assert jnp.allclose(out, ref_f32, atol=1e-1, rtol=1e-1), \
        "kernel mismatch vs f32 reference"

    print("KERNEL_OK")
</pallas_src>

<mosaic_0001>
module attributes {stable_mosaic.version = 11 : i64} {
  func.func @_encoder_block_kernel(%arg0: i32, %arg1: memref<16x32xf32, #tpu.memory_space<vmem>>, %arg2: memref<16x16xf32, #tpu.memory_space<vmem>>, %arg3: memref<32x96xbf16, #tpu.memory_space<vmem>>, %arg4: memref<1x96xf32, #tpu.memory_space<vmem>>, %arg5: memref<4x8x32xbf16, #tpu.memory_space<vmem>>, %arg6: memref<1x32xf32, #tpu.memory_space<vmem>>, %arg7: memref<32x64xbf16, #tpu.memory_space<vmem>>, %arg8: memref<1x64xf32, #tpu.memory_space<vmem>>, %arg9: memref<64x32xbf16, #tpu.memory_space<vmem>>, %arg10: memref<1x32xf32, #tpu.memory_space<vmem>>, %arg11: memref<16x32xf32, #tpu.memory_space<vmem>>) attributes {dimension_semantics = [#tpu.dimension_semantics<arbitrary>], iteration_bounds = array<i64: 1>, scalar_prefetch = 0 : i64, scratch_operands = 0 : i64, tpu.core_type = #tpu.core_type<tc>, window_params = [{pipeline_mode = #tpu.pipeline_mode<synchronous>, transform_indices = @transform_0, window_bounds = array<i64: 16, 32>}, {pipeline_mode = #tpu.pipeline_mode<synchronous>, transform_indices = @transform_1, window_bounds = array<i64: 16, 16>}, {pipeline_mode = #tpu.pipeline_mode<synchronous>, transform_indices = @transform_2, window_bounds = array<i64: 32, 96>}, {pipeline_mode = #tpu.pipeline_mode<synchronous>, transform_indices = @transform_3, window_bounds = array<i64: 1, 96>}, {pipeline_mode = #tpu.pipeline_mode<synchronous>, transform_indices = @transform_4, window_bounds = array<i64: 4, 8, 32>}, {pipeline_mode = #tpu.pipeline_mode<synchronous>, transform_indices = @transform_5, window_bounds = array<i64: 1, 32>}, {pipeline_mode = #tpu.pipeline_mode<synchronous>, transform_indices = @transform_6, window_bounds = array<i64: 32, 64>}, {pipeline_mode = #tpu.pipeline_mode<synchronous>, transform_indices = @transform_7, window_bounds = array<i64: 1, 64>}, {pipeline_mode = #tpu.pipeline_mode<synchronous>, transform_indices = @transform_8, window_bounds = array<i64: 64, 32>}, {pipeline_mode = #tpu.pipeline_mode<synchronous>, transform_indices = @transform_9, window_bounds = array<i64: 1, 32>}, {pipeline_mode = #tpu.pipeline_mode<synchronous>, transform_indices = @transform_10, window_bounds = array<i64: 16, 32>}]} {
    %c0 = arith.constant 0 : index
    %c0_0 = arith.constant 0 : index
    %0 = vector.load %arg1[%c0, %c0_0] : memref<16x32xf32, #tpu.memory_space<vmem>>, vector<16x32xf32>
    %1 = arith.truncf %0 : vector<16x32xf32> to vector<16x32xbf16>
    %c0_1 = arith.constant 0 : index
    %c0_2 = arith.constant 0 : index
    %2 = vector.load %arg3[%c0_1, %c0_2] : memref<32x96xbf16, #tpu.memory_space<vmem>>, vector<32x96xbf16>
    %cst = arith.constant dense<0.000000e+00> : vector<16x96xf32>
    %3 = tpu.matmul %1, %2, %cst {dimension_numbers = #tpu.dot_dimension_numbers<[1], [0], [0], [1], [0, 0, 1, 1], [], []>} : vector<16x32xbf16>, vector<32x96xbf16>, vector<16x96xf32> -> vector<16x96xf32>
    %c0_3 = arith.constant 0 : index
    %c0_4 = arith.constant 0 : index
    %4 = vector.load %arg4[%c0_3, %c0_4] : memref<1x96xf32, #tpu.memory_space<vmem>>, vector<1x96xf32>
    %5 = vector.broadcast %4 : vector<1x96xf32> to vector<16x96xf32>
    %6 = arith.addf %3, %5 : vector<16x96xf32>
    %7 = vector.extract_strided_slice %6 {offsets = [0, 0], sizes = [16, 24], strides = [1, 1]} : vector<16x96xf32> to vector<16x24xf32>
    %8 = vector.extract_strided_slice %6 {offsets = [0, 24], sizes = [16, 24], strides = [1, 1]} : vector<16x96xf32> to vector<16x24xf32>
    %9 = vector.extract_strided_slice %6 {offsets = [0, 48], sizes = [16, 24], strides = [1, 1]} : vector<16x96xf32> to vector<16x24xf32>
    %10 = vector.extract_strided_slice %6 {offsets = [0, 72], sizes = [16, 24], strides = [1, 1]} : vector<16x96xf32> to vector<16x24xf32>
    %11 = vector.shape_cast %7 : vector<16x24xf32> to vector<1x16x24xf32>
    %12 = vector.shape_cast %8 : vector<16x24xf32> to vector<1x16x24xf32>
    %13 = vector.shape_cast %9 : vector<16x24xf32> to vector<1x16x24xf32>
    %14 = vector.shape_cast %10 : vector<16x24xf32> to vector<1x16x24xf32>
    %15 = tpu.concatenate %11, %12, %13, %14 in 0 : vector<1x16x24xf32>, vector<1x16x24xf32>, vector<1x16x24xf32>, vector<1x16x24xf32> -> vector<4x16x24xf32>
    %16 = vector.extract_strided_slice %15 {offsets = [0, 0, 0], sizes = [4, 16, 8], strides = [1, 1, 1]} : vector<4x16x24xf32> to vector<4x16x8xf32>
    %17 = vector.extract_strided_slice %15 {offsets = [0, 0, 8], sizes = [4, 16, 8], strides = [1, 1, 1]} : vector<4x16x24xf32> to vector<4x16x8xf32>
    %18 = vector.extract_strided_slice %15 {offsets = [0, 0, 16], sizes = [4, 16, 8], strides = [1, 1, 1]} : vector<4x16x24xf32> to vector<4x16x8xf32>
    %19 = arith.truncf %16 : vector<4x16x8xf32> to vector<4x16x8xbf16>
    %20 = arith.truncf %17 : vector<4x16x8xf32> to vector<4x16x8xbf16>
    "tpu.trace_start"() <{level = 10 : i32, message = "hqd,hkd->hqk"}> : () -> ()
    %cst_5 = arith.constant dense<0.000000e+00> : vector<4x16x16xf32>
    %21 = tpu.matmul %19, %20, %cst_5 {dimension_numbers = #tpu.dot_dimension_numbers<[2], [2], [1], [1], [0, 0, 0, 1, 1, 1], [0], [0]>} : vector<4x16x8xbf16>, vector<4x16x8xbf16>, vector<4x16x16xf32> -> vector<4x16x16xf32>
    "tpu.trace_stop"() : () -> ()
    %cst_6 = arith.constant 0.353553385 : f32
    %22 = vector.broadcast %cst_6 : f32 to vector<4x16x16xf32>
    %23 = arith.mulf %21, %22 : vector<4x16x16xf32>
    %c0_7 = arith.constant 0 : index
    %c0_8 = arith.constant 0 : index
    %24 = vector.load %arg2[%c0_7, %c0_8] : memref<16x16xf32, #tpu.memory_space<vmem>>, vector<16x16xf32>
    %25 = vector.shape_cast %24 : vector<16x16xf32> to vector<1x16x16xf32>
    %26 = vector.broadcast %25 : vector<1x16x16xf32> to vector<4x16x16xf32>
    %27 = arith.addf %23, %26 : vector<4x16x16xf32>
    %cst_9 = arith.constant dense<0xFF800000> : vector<4x16xf32>
    %28 = vector.multi_reduction <maximumf>, %27, %cst_9 [2] : vector<4x16x16xf32> to vector<4x16xf32>
    %29 = vector.shape_cast %28 : vector<4x16xf32> to vector<4x16x1xf32>
    %30 = vector.broadcast %29 : vector<4x16x1xf32> to vector<4x16x16xf32>
    %31 = arith.subf %27, %30 : vector<4x16x16xf32>
    %32 = math.exp %31 : vector<4x16x16xf32>
    %cst_10 = arith.constant dense<0.000000e+00> : vector<4x16xf32>
    %33 = vector.multi_reduction <add>, %32, %cst_10 [2] : vector<4x16x16xf32> to vector<4x16xf32>
    %34 = vector.shape_cast %33 : vector<4x16xf32> to vector<4x16x1xf32>
    %35 = vector.broadcast %34 : vector<4x16x1xf32> to vector<4x16x16xf32>
    %36 = arith.divf %32, %35 : vector<4x16x16xf32>
    %37 = arith.truncf %36 : vector<4x16x16xf32> to vector<4x16x16xbf16>
    %38 = arith.truncf %18 : vector<4x16x8xf32> to vector<4x16x8xbf16>
    "tpu.trace_start"() <{level = 10 : i32, message = "hqk,hkd->hqd"}> : () -> ()
    %cst_11 = arith.constant dense<0.000000e+00> : vector<4x16x8xf32>
    %39 = tpu.matmul %37, %38, %cst_11 {dimension_numbers = #tpu.dot_dimension_numbers<[2], [1], [1], [2], [0, 0, 0, 1, 1, 2], [0], [0]>} : vector<4x16x16xbf16>, vector<4x16x8xbf16>, vector<4x16x8xf32> -> vector<4x16x8xf32>
    "tpu.trace_stop"() : () -> ()
    %40 = arith.truncf %39 : vector<4x16x8xf32> to vector<4x16x8xbf16>
    %c0_12 = arith.constant 0 : index
    %c0_13 = arith.constant 0 : index
    %c0_14 = arith.constant 0 : index
    %41 = vector.load %arg5[%c0_12, %c0_13, %c0_14] : memref<4x8x32xbf16, #tpu.memory_space<vmem>>, vector<4x8x32xbf16>
    "tpu.trace_start"() <{level = 10 : i32, message = "hrd,hde->hre"}> : () -> ()
    %cst_15 = arith.constant dense<0.000000e+00> : vector<4x16x32xf32>
    %42 = tpu.matmul %40, %41, %cst_15 {dimension_numbers = #tpu.dot_dimension_numbers<[2], [1], [1], [2], [0, 0, 0, 1, 1, 2], [0], [0]>} : vector<4x16x8xbf16>, vector<4x8x32xbf16>, vector<4x16x32xf32> -> vector<4x16x32xf32>
    "tpu.trace_stop"() : () -> ()
    %cst_16 = arith.constant dense<0.000000e+00> : vector<16x32xf32>
    %43 = vector.multi_reduction <add>, %42, %cst_16 [0] : vector<4x16x32xf32> to vector<16x32xf32>
    %c0_17 = arith.constant 0 : index
    %c0_18 = arith.constant 0 : index
    %44 = vector.load %arg6[%c0_17, %c0_18] : memref<1x32xf32, #tpu.memory_space<vmem>>, vector<1x32xf32>
    %45 = vector.broadcast %44 : vector<1x32xf32> to vector<16x32xf32>
    %46 = arith.addf %43, %45 : vector<16x32xf32>
    %47 = arith.addf %46, %0 : vector<16x32xf32>
    %48 = arith.truncf %47 : vector<16x32xf32> to vector<16x32xbf16>
    %c0_19 = arith.constant 0 : index
    %c0_20 = arith.constant 0 : index
    %49 = vector.load %arg7[%c0_19, %c0_20] : memref<32x64xbf16, #tpu.memory_space<vmem>>, vector<32x64xbf16>
    %cst_21 = arith.constant dense<0.000000e+00> : vector<16x64xf32>
    %50 = tpu.matmul %48, %49, %cst_21 {dimension_numbers = #tpu.dot_dimension_numbers<[1], [0], [0], [1], [0, 0, 1, 1], [], []>} : vector<16x32xbf16>, vector<32x64xbf16>, vector<16x64xf32> -> vector<16x64xf32>
    %c0_22 = arith.constant 0 : index
    %c0_23 = arith.constant 0 : index
    %51 = vector.load %arg8[%c0_22, %c0_23] : memref<1x64xf32, #tpu.memory_space<vmem>>, vector<1x64xf32>
    %52 = vector.broadcast %51 : vector<1x64xf32> to vector<16x64xf32>
    %53 = arith.addf %50, %52 : vector<16x64xf32>
    %cst_24 = arith.constant 0.000000e+00 : f32
    %54 = vector.broadcast %cst_24 : f32 to vector<16x64xf32>
    %55 = arith.maximumf %53, %54 : vector<16x64xf32>
    %56 = arith.truncf %55 : vector<16x64xf32> to vector<16x64xbf16>
    %c0_25 = arith.constant 0 : index
    %c0_26 = arith.constant 0 : index
    %57 = vector.load %arg9[%c0_25, %c0_26] : memref<64x32xbf16, #tpu.memory_space<vmem>>, vector<64x32xbf16>
    %cst_27 = arith.constant dense<0.000000e+00> : vector<16x32xf32>
    %58 = tpu.matmul %56, %57, %cst_27 {dimension_numbers = #tpu.dot_dimension_numbers<[1], [0], [0], [1], [0, 0, 1, 1], [], []>} : vector<16x64xbf16>, vector<64x32xbf16>, vector<16x32xf32> -> vector<16x32xf32>
    %c0_28 = arith.constant 0 : index
    %c0_29 = arith.constant 0 : index
    %59 = vector.load %arg10[%c0_28, %c0_29] : memref<1x32xf32, #tpu.memory_space<vmem>>, vector<1x32xf32>
    %60 = vector.broadcast %59 : vector<1x32xf32> to vector<16x32xf32>
    %61 = arith.addf %58, %60 : vector<16x32xf32>
    %62 = arith.addf %61, %47 : vector<16x32xf32>
    %c0_30 = arith.constant 0 : index
    %c0_31 = arith.constant 0 : index
    %63 = vector.load %arg11[%c0_30, %c0_31] : memref<16x32xf32, #tpu.memory_space<vmem>>, vector<16x32xf32>
    tpu.vector_store %arg11[%c0_30, %c0_31], %62 {strides = array<i32>} : memref<16x32xf32, #tpu.memory_space<vmem>>, vector<16x32xf32>,
    return
  }
  func.func @transform_0(%arg0: i32) -> (i32, i32) {
    %c0_i32 = arith.constant 0 : i32
    %c0_i32_0 = arith.constant 0 : i32
    %c0_i32_1 = arith.constant 0 : i32
    return %c0_i32, %c0_i32_0 : i32, i32
  }
  func.func @transform_1(%arg0: i32) -> (i32, i32) {
    %c0_i32 = arith.constant 0 : i32
    %c0_i32_0 = arith.constant 0 : i32
    %c0_i32_1 = arith.constant 0 : i32
    return %c0_i32, %c0_i32_0 : i32, i32
  }
  func.func @transform_2(%arg0: i32) -> (i32, i32) {
    %c0_i32 = arith.constant 0 : i32
    %c0_i32_0 = arith.constant 0 : i32
    %c0_i32_1 = arith.constant 0 : i32
    return %c0_i32, %c0_i32_0 : i32, i32
  }
  func.func @transform_3(%arg0: i32) -> (i32, i32) {
    %c0_i32 = arith.constant 0 : i32
    %c0_i32_0 = arith.constant 0 : i32
    %c0_i32_1 = arith.constant 0 : i32
    return %c0_i32, %c0_i32_0 : i32, i32
  }
  func.func @transform_4(%arg0: i32) -> (i32, i32, i32) {
    %c0_i32 = arith.constant 0 : i32
    %c0_i32_0 = arith.constant 0 : i32
    %c0_i32_1 = arith.constant 0 : i32
    %c0_i32_2 = arith.constant 0 : i32
    return %c0_i32, %c0_i32_0, %c0_i32_1 : i32, i32, i32
  }
  func.func @transform_5(%arg0: i32) -> (i32, i32) {
    %c0_i32 = arith.constant 0 : i32
    %c0_i32_0 = arith.constant 0 : i32
    %c0_i32_1 = arith.constant 0 : i32
    return %c0_i32, %c0_i32_0 : i32, i32
  }
  func.func @transform_6(%arg0: i32) -> (i32, i32) {
    %c0_i32 = arith.constant 0 : i32
    %c0_i32_0 = arith.constant 0 : i32
    %c0_i32_1 = arith.constant 0 : i32
    return %c0_i32, %c0_i32_0 : i32, i32
  }
  func.func @transform_7(%arg0: i32) -> (i32, i32) {
    %c0_i32 = arith.constant 0 : i32
    %c0_i32_0 = arith.constant 0 : i32
    %c0_i32_1 = arith.constant 0 : i32
    return %c0_i32, %c0_i32_0 : i32, i32
  }
  func.func @transform_8(%arg0: i32) -> (i32, i32) {
    %c0_i32 = arith.constant 0 : i32
    %c0_i32_0 = arith.constant 0 : i32
    %c0_i32_1 = arith.constant 0 : i32
    return %c0_i32, %c0_i32_0 : i32, i32
  }
  func.func @transform_9(%arg0: i32) -> (i32, i32) {
    %c0_i32 = arith.constant 0 : i32
    %c0_i32_0 = arith.constant 0 : i32
    %c0_i32_1 = arith.constant 0 : i32
    return %c0_i32, %c0_i32_0 : i32, i32
  }
  func.func @transform_10(%arg0: i32) -> (i32, i32) {
    %c0_i32 = arith.constant 0 : i32
    %c0_i32_0 = arith.constant 0 : i32
    %c0_i32_1 = arith.constant 0 : i32
    return %c0_i32, %c0_i32_0 : i32, i32
  }
}

</mosaic_0001>

<bundles_post_ra>
// kernel: encoder_block_forward.1
= control target key start
LH: loop header
LB: loop body
LE: loop exit
PB: predicated region body
PF: predicated region fallthrough
CT: control target
= control target key end

     0   :  { %v1280_v1 = vmov 0.0   ;;  %vm1281_vm0 = vmmov 0   ;;  %vm63_vm1 = vcmask 261120   ;;  %s1547_s0 = inlined_call_operand.vmem [shape: f32[16,32], index: 0, kind: input, shape index: {}]   ;;  %s1548_s1 = inlined_call_operand.vmem [shape: f32[16,16], index: 1, kind: input, shape index: {}]   ;;  %s1549_s2 = inlined_call_operand.vmem [shape: bf16[32,96], index: 2, kind: input, shape index: {}]   ;;  %s1550_s3 = inlined_call_operand.vmem [shape: f32[1,96], index: 3, kind: input, shape index: {}]   ;;  %s1551_s4 = inlined_call_operand.vmem [shape: bf16[4,8,32], index: 4, kind: input, shape index: {}]   ;;  %s1552_s5 = inlined_call_operand.vmem [shape: f32[1,32], index: 5, kind: input, shape index: {}]   ;;  %s1553_s6 = inlined_call_operand.vmem [shape: bf16[32,64], index: 6, kind: input, shape index: {}]   ;;  %s1554_s7 = inlined_call_operand.vmem [shape: f32[1,64], index: 7, kind: input, shape index: {}]   ;;  %s1555_s8 = inlined_call_operand.vmem [shape: bf16[64,32], index: 8, kind: input, shape index: {}]   ;;  %s1556_s9 = inlined_call_operand.vmem [shape: f32[1,32], index: 9, kind: input, shape index: {}]   ;;  %s1557_s10 = inlined_call_operand.hbm [shape: f32[16,32], index: 10, kind: output, shape index: {}]  }
   0x1   :  { %v1216_v0 = vld [vmem:[%s1549_s2] sm:$0xff]   ;;  %1091 = vmatprep.subr.bf16.mxu1 %v1280_v1  ;;  %1105 = vmatprep.subr.bf16.mxu0 %v1280_v1  ;;  %v1217_v2 = vld [vmem:[%s1549_s2 + $0x8] sm:$0xff]  }
   0x2   :  { %1092 = vmatpush3.bf16.msra.mxu1 %v1216_v0  ;;  %1095 = vmatprep.mubr.msk.bf16.mxu1 %vm1281_vm0, %v1280_v1  ;;  %v1358_v3 = vld [vmem:[%s1547_s0] sm:$0xff]  ;;  %v1363_v4 = vld [vmem:[%s1547_s0 + $0x8] sm:$0xff] }
   0x3   :  { %1093 = vmatprep.subr.bf16.mxu1 %v1280_v1  ;;  %1107 = vmatprep.mubr.msk.bf16.mxu0 %vm1281_vm0, %v1280_v1  ;;  %v39_v5 = vpack.c.bf16 %v1363_v4, %v1358_v3 }
   0x6   :  { %1094 = vmatpush3.bf16.msra.mxu1 %v1217_v2 }
   0x7   :  { %1099 = vmatprep.subr.bf16.mxu1 %v1280_v1 }
   0x8   :  { %15 = vsyncpa [#allocation3], 0  ;;  %v1029_v6 = vld [vmem:[%s1550_s3] ss:$0 sm:$0xff]  ;;  %s1282_s21 = smov 56   ;;  %s1283_s22 = smov 104  }
   0x9   :  { %1096 = vmatmul.mubr.msk.bf16.vlgmr.msra.gmra.mrb[0].mxu1 %vm63_vm1, %v39_v5  ;;  %s1284_s23 = smov 80   ;;  %s1285_s24 = smov 120   ;;  %vm135_vm2 = vcmask 64512   ;;  %v341_v36 = vld [vmem:[%s1548_s1] sm:$0xff]  ;;  %vm351_vm3 = vcmask 130048   ;;  %v342_v40 = vld [vmem:[%s1548_s1 + $0x8] sm:$0xff] }
   0xa   :  { %1101 = vmatprep.mubr.msk.bf16.mxu1 %vm1281_vm0, %v1280_v1  ;;  %s1286_s1 = smov 112   ;;  %vm643_vm4 = vcmask 1043456   ;;  %vm964_vm5 = vcmask 523264  }
  0xdc   :  { %v101_v7 = vpop.f32.mrb[0].mxu1 }
  0xdd   :  { %v1097_v8 = vpop.f32.mrb[1].mxu1  ;;  %v102_v10 = vadd.f32 %v1029_v6, %v101_v7 }
  0xde   :  { %v104_v9 = vpop.f32.mrb[2].mxu1 }
  0xdf   :  { %v105_v11 = vadd.f32 %v1029_v6, %v104_v9  ;;  %v1098_v12 = vpop.f32.mrb[3].mxu1 }
  0xe1   :  { %v1211_v13 = vpack.i.bf16 %v105_v11, %v102_v10  ;;  %v1377_v14 = vpack.c.bf16 %v105_v11, %v102_v10 }
  0xe3   :  { %1212 = vrot.lane.b32.xlu1 %v1211_v13, %s1282_s21  ;;  %1202 = vrot.lane.b32.xlu0 %v1211_v13, %s1283_s22 }
  0xe7   :  { %1207 = vrot.lane.b32.xlu0 %v1211_v13, %s1284_s23  ;;  %133 = vrot.lane.b32.xlu1 %v1377_v14, %s1285_s24 }
 0x155   :  { %v1213_v15 = vpop.permute.xlu1 %1212  ;;  %v1203_v16 = vpop.permute.xlu0 %1202 }
 0x156   :  { %v1205_v17 = vunpack.i.h.bf16 %v1203_v16  ;;  %v1204_v18 = vunpack.i.l.bf16 %v1203_v16  ;;  %v1215_v19 = vunpack.i.h.bf16 %v1213_v15  ;;  %v1214_v20 = vunpack.i.l.bf16 %v1213_v15 }
 0x158   :  { %v1380_v21 = vpack.c.bf16 %v1205_v17, %v1204_v18  ;;  %v1384_v27 = vpack.c.bf16 %v1215_v19, %v1214_v20 }
 0x159   :  { %v1208_v22 = vpop.permute.xlu0 %1207  ;;  %v134_v23 = vpop.permute.xlu1 %133 }
 0x15a   :  { %v1210_v24 = vunpack.i.h.bf16 %v1208_v22  ;;  %v1209_v25 = vunpack.i.l.bf16 %v1208_v22  ;;  %v140_v26 = vsel %vm135_vm2, %v134_v23, 0  ;;  %184 = vrot.lane.b32.xlu0 %v1380_v21, %s1285_s24 }
 0x15b   :  { %1100 = vmatpush3.bf16.xpose.msra.mxu1 %v140_v26 }
 0x15c   :  { %v1386_v28 = vpack.c.bf16 %v1210_v24, %v1209_v25  ;;  %1111 = vmatprep.subr.bf16.mxu1 %v1280_v1 }
 0x15e   :  { %284 = vrot.lane.b32.xlu0 %v1384_v27, %s1285_s24  ;;  %234 = vrot.lane.b32.xlu1 %v1386_v28, %s1285_s24 }
 0x162   :  { %1102 = vmatmul.mubr.msk.bf16.vlgmr.msra.gmra.mrb[4].mxu1 %vm135_vm2, %v1377_v14 }
 0x163   :  { %1113 = vmatprep.mubr.msk.bf16.mxu1 %vm1281_vm0, %v1280_v1 }
 0x1cc   :  { %v185_v29 = vpop.permute.xlu0 %184 }
 0x1cd   :  { %v190_v30 = vsel %vm135_vm2, %v185_v29, 0 }
 0x1ce   :  { %1106 = vmatpush3.bf16.xpose.msra.mxu0 %v190_v30 }
 0x1cf   :  { %1117 = vmatprep.subr.bf16.mxu0 %v1280_v1 }
 0x1d0   :  { %v235_v31 = vpop.permute.xlu1 %234  ;;  %v285_v33 = vpop.permute.xlu0 %284 }
 0x1d1   :  { %v240_v32 = vsel %vm135_vm2, %v235_v31, 0  ;;  %v290_v34 = vsel %vm135_vm2, %v285_v33, 0 }
 0x1d2   :  { %1112 = vmatpush3.bf16.xpose.msra.mxu1 %v240_v32 }
 0x1d3   :  { %1123 = vmatprep.subr.bf16.mxu1 %v1280_v1 }
 0x1d5   :  { %1108 = vmatmul.mubr.msk.bf16.vlgmr.msra.gmra.mrb[0].mxu0 %vm135_vm2, %v1380_v21 }
 0x1d6   :  { %1118 = vmatpush3.bf16.xpose.msra.mxu0 %v290_v34  ;;  %1119 = vmatprep.mubr.msk.bf16.mxu0 %vm1281_vm0, %v1280_v1 }
 0x1d7   :  { %1129 = vmatprep.subr.bf16.mxu0 %v1280_v1 }
 0x1d9   :  { %1114 = vmatmul.mubr.msk.bf16.vlgmr.msra.gmra.mrb[8].mxu1 %vm135_vm2, %v1386_v28 }
 0x1da   :  { %1125 = vmatprep.mubr.msk.bf16.mxu1 %vm1281_vm0, %v1280_v1 }
 0x1dd   :  { %1120 = vmatmul.mubr.msk.bf16.vlgmr.msra.gmra.mrb[4].mxu0 %vm135_vm2, %v1384_v27 }
 0x1de   :  { %1131 = vmatprep.mubr.msk.bf16.mxu0 %vm1281_vm0, %v1280_v1 }
 0x235   :  { %v176_v35 = vpop.f32.mrb[4].mxu1 }
 0x236   :  { %v333_v37 = vmul.f32 0.35355338, %v176_v35  ;;  %v1103_v38 = vpop.f32.mrb[5].mxu1 }
 0x237   :  { %v179_v39 = vpop.f32.mrb[6].mxu1 }
 0x238   :  { %v334_v41 = vmul.f32 0.35355338, %v179_v39  ;;  %v1104_v42 = vpop.f32.mrb[7].mxu1  ;;  %v343_v43 = vadd.f32 %v341_v36, %v333_v37 }
 0x23a   :  { %v352_v44 = vsel %vm351_vm3, %v343_v43, -inf  ;;  %v344_v45 = vadd.f32 %v342_v40, %v334_v41 }
 0x23b   :  { %353 = vmax.xlane.f32.xlu1 %v352_v44 }
 0x23c   :  { %v355_v46 = vsel %vm351_vm3, %v344_v45, -inf }
 0x23d   :  { %356 = vmax.xlane.f32.xlu0 %v355_v46 }
 0x2a8   :  { %v226_v47 = vpop.f32.mrb[0].mxu0 }
 0x2a9   :  { %v335_v48 = vmul.f32 0.35355338, %v226_v47  ;;  %v1109_v49 = vpop.f32.mrb[1].mxu0 }
 0x2aa   :  { %v229_v50 = vpop.f32.mrb[2].mxu0 }
 0x2ab   :  { %v336_v51 = vmul.f32 0.35355338, %v229_v50  ;;  %v1110_v52 = vpop.f32.mrb[3].mxu0  ;;  %v345_v53 = vadd.f32 %v341_v36, %v335_v48 }
 0x2ac   :  { %v276_v54 = vpop.f32.mrb[8].mxu1 }
 0x2ad   :  { %v337_v55 = vmul.f32 0.35355338, %v276_v54  ;;  %v1115_v56 = vpop.f32.mrb[9].mxu1  ;;  %v358_v57 = vsel %vm351_vm3, %v345_v53, -inf  ;;  %v346_v58 = vadd.f32 %v342_v40, %v336_v51 }
 0x2ae   :  { %359 = vmax.xlane.f32.xlu0 %v358_v57  ;;  %v279_v59 = vpop.f32.mrb[10].mxu1 }
 0x2af   :  { %v338_v60 = vmul.f32 0.35355338, %v279_v59  ;;  %v1116_v61 = vpop.f32.mrb[11].mxu1  ;;  %v361_v62 = vsel %vm351_vm3, %v346_v58, -inf  ;;  %v347_v63 = vadd.f32 %v341_v36, %v337_v55 }
 0x2b0   :  { %v326_v0 = vpop.f32.mrb[4].mxu0  ;;  %362 = vmax.xlane.f32.xlu1 %v361_v62 }
 0x2b1   :  { %v339_v2 = vmul.f32 0.35355338, %v326_v0  ;;  %v1121_v5 = vpop.f32.mrb[5].mxu0  ;;  %v364_v6 = vsel %vm351_vm3, %v347_v63, -inf  ;;  %v348_v7 = vadd.f32 %v342_v40, %v338_v60 }
 0x2b2   :  { %v329_v8 = vpop.f32.mrb[6].mxu0  ;;  %365 = vmax.xlane.f32.xlu0 %v364_v6 }
 0x2b3   :  { %v340_v9 = vmul.f32 0.35355338, %v329_v8  ;;  %v1122_v10 = vpop.f32.mrb[7].mxu0  ;;  %v367_v11 = vsel %vm351_vm3, %v348_v7, -inf  ;;  %v349_v12 = vadd.f32 %v341_v36, %v339_v2 }
 0x2b4   :  { %368 = vmax.xlane.f32.xlu1 %v367_v11 }
 0x2b5   :  { %v370_v13 = vsel %vm351_vm3, %v349_v12, -inf  ;;  %v350_v15 = vadd.f32 %v342_v40, %v340_v9 }
 0x2b6   :  { %371 = vmax.xlane.f32.xlu0 %v370_v13 }
 0x2b7   :  { %v373_v16 = vsel %vm351_vm3, %v350_v15, -inf }
 0x2b8   :  { %374 = vmax.xlane.f32.xlu1 %v373_v16 }
 0x2c8   :  { %v354_v17 = vpop.xlane.xlu1 %353 }
 0x2c9   :  { %491 = vrot.lane.b32.xlu1 %v1380_v21, %s1286_s1  ;;  %v376_v19 = vsub.f32 %v343_v43, %v354_v17 }
 0x2ca   :  { %v357_v18 = vpop.xlane.xlu0 %356 }
 0x2cb   :  { %v377_v20 = vsub.f32 %v344_v45, %v357_v18  ;;  %v384_v22 = vmul.f32 1.442695, %v376_v19  ;;  %v636_v19 = vld [vmem:[%s1551_s4] sm:$0xf] }
 0x2cc   :  { %444 = vrot.lane.b32.xlu0 %v1377_v14, %s1286_s1 }
 0x2cd   :  { %v386_v23 = vmul.f32 1.442695, %v377_v20  ;;  %1224 = vpow2.f32 %v384_v22 }
 0x2cf   :  { %1226 = vpow2.f32 %v386_v23 }
 0x2d7   :  { %v1225_v24 = vpop.eup %1224 }
 0x2d8   :  { %v400_v26 = vsel %vm351_vm3, %v1225_v24, 0.0 }
 0x2d9   :  { %v1227_v25 = vpop.eup %1226 }
 0x2da   :  { %v403_v29 = vsel %vm351_vm3, %v1227_v25, 0.0 }
 0x2eb   :  { %401 = vadd.xlane.f32.xlu0 %v400_v26  ;;  %v645_v26 = vsel %vm643_vm4, %v636_v19, 0 }
 0x2ed   :  { %404 = vadd.xlane.f32.xlu1 %v403_v29 }
 0x33b   :  { %v360_v21 = vpop.xlane.xlu0 %359 }
 0x33c   :  { %v378_v30 = vsub.f32 %v345_v53, %v360_v21  ;;  %v637_v21 = vld [vmem:[%s1551_s4 + $0x4] sm:$0xf] }
 0x33d   :  { %v363_v31 = vpop.xlane.xlu1 %362 }
 0x33e   :  { %v388_v14 = vmul.f32 1.442695, %v378_v30  ;;  %v379_v32 = vsub.f32 %v346_v58, %v363_v31 }
 0x33f   :  { %v366_v33 = vpop.xlane.xlu0 %365 }
 0x340   :  { %1228 = vpow2.f32 %v388_v14  ;;  %v390_v34 = vmul.f32 1.442695, %v379_v32  ;;  %v380_v35 = vsub.f32 %v347_v63, %v366_v33  ;;  %v692_v32 = vsel %vm643_vm4, %v637_v21, 0 }
 0x341   :  { %v369_v36 = vpop.xlane.xlu1 %368 }
 0x342   :  { %1230 = vpow2.f32 %v390_v34  ;;  %v392_v37 = vmul.f32 1.442695, %v380_v35  ;;  %v381_v38 = vsub.f32 %v348_v7, %v369_v36  ;;  %v638_v34 = vld [vmem:[%s1551_s4 + $0x8] sm:$0xf] }
 0x343   :  { %v372_v39 = vpop.xlane.xlu0 %371 }
 0x344   :  { %1232 = vpow2.f32 %v392_v37  ;;  %v394_v40 = vmul.f32 1.442695, %v381_v38  ;;  %v382_v41 = vsub.f32 %v349_v12, %v372_v39  ;;  %v739_v39 = vsel %vm643_vm4, %v638_v34, 0 }
 0x345   :  { %v375_v42 = vpop.xlane.xlu1 %374 }
 0x346   :  { %1234 = vpow2.f32 %v394_v40  ;;  %v396_v43 = vmul.f32 1.442695, %v382_v41  ;;  %v383_v44 = vsub.f32 %v350_v15, %v375_v42  ;;  %v639_v41 = vld [vmem:[%s1551_s4 + $0xc] sm:$0xf] }
 0x347   :  { %v445_v45 = vpop.permute.xlu0 %444 }
 0x348   :  { %1236 = vpow2.f32 %v396_v43  ;;  %v398_v46 = vmul.f32 1.442695, %v383_v44  ;;  %1124 = vmatpush3.bf16.msra.mxu1 %v445_v45 }
 0x349   :  { %v492_v47 = vpop.permute.xlu1 %491  ;;  %1135 = vmatprep.subr.bf16.mxu1 %v1280_v1 }
 0x34a   :  { %v1229_v48 = vpop.eup %1228  ;;  %1238 = vpow2.f32 %v398_v46  ;;  %1130 = vmatpush3.bf16.msra.mxu0 %v492_v47  ;;  %v786_v46 = vsel %vm643_vm4, %v639_v41, 0 }
 0x34b   :  { %v406_v49 = vsel %vm351_vm3, %v1229_v48, 0.0  ;;  %1141 = vmatprep.subr.bf16.mxu0 %v1280_v1 }
 0x34c   :  { %v1231_v50 = vpop.eup %1230  ;;  %407 = vadd.xlane.f32.xlu0 %v406_v49 }
 0x34d   :  { %v409_v51 = vsel %vm351_vm3, %v1231_v50, 0.0 }
 0x34e   :  { %v1233_v52 = vpop.eup %1232  ;;  %410 = vadd.xlane.f32.xlu1 %v409_v51 }
 0x34f   :  { %v412_v53 = vsel %vm351_vm3, %v1233_v52, 0.0 }
 0x350   :  { %v1235_v54 = vpop.eup %1234  ;;  %413 = vadd.xlane.f32.xlu0 %v412_v53 }
 0x351   :  { %v415_v55 = vsel %vm351_vm3, %v1235_v54, 0.0 }
 0x352   :  { %v1237_v56 = vpop.eup %1236  ;;  %416 = vadd.xlane.f32.xlu1 %v415_v55 }
 0x353   :  { %v418_v57 = vsel %vm351_vm3, %v1237_v56, 0.0 }
 0x354   :  { %v1239_v58 = vpop.eup %1238  ;;  %419 = vadd.xlane.f32.xlu0 %v418_v57  ;;  %v1218_v57 = vld [vmem:[%s1553_s6] sm:$0xff]  }
 0x355   :  { %v421_v59 = vsel %vm351_vm3, %v1239_v58, 0.0 }
 0x356   :  { %422 = vadd.xlane.f32.xlu1 %v421_v59  ;;  %v1220_v59 = vld [vmem:[%s1555_s8] sm:$0xff]  }
 0x367   :  { %538 = vrot.lane.b32.xlu1 %v1386_v28, %s1286_s1 }
 0x36a   :  { %585 = vrot.lane.b32.xlu0 %v1384_v27, %s1286_s1 }
 0x378   :  { %v402_v60 = vpop.xlane.xlu0 %401 }
 0x379   :  { %1240 = vrcp.f32 %v402_v60  ;;  %v1221_v60 = vld [vmem:[%s1555_s8 + $0x8] sm:$0xff]  }
 0x37a   :  { %v405_v61 = vpop.xlane.xlu1 %404 }
 0x37b   :  { %1242 = vrcp.f32 %v405_v61 }
 0x383   :  { %v1241_v62 = vpop.eup %1240 }
 0x384   :  { %v425_v0 = vmul.f32 %v1241_v62, %v1225_v24 }
 0x385   :  { %v1243_v63 = vpop.eup %1242 }
 0x386   :  { %v427_v2 = vmul.f32 %v1243_v63, %v1227_v25 }
 0x388   :  { %v440_v5 = vpack.c.bf16 %v427_v2, %v425_v0 }
 0x38a   :  { %1126 = vmatmul.mubr.msk.bf16.vlgmr.msra.gmra.mrb[12].mxu1 %vm351_vm3, %v440_v5 }
 0x38b   :  { %1137 = vmatprep.mubr.msk.bf16.mxu1 %vm1281_vm0, %v1280_v1 }
 0x3d9   :  { %v408_v6 = vpop.xlane.xlu0 %407 }
 0x3da   :  { %1244 = vrcp.f32 %v408_v6 }
 0x3db   :  { %v411_v28 = vpop.xlane.xlu1 %410 }
 0x3dc   :  { %1246 = vrcp.f32 %v411_v28 }
 0x3dd   :  { %v414_v7 = vpop.xlane.xlu0 %413 }
 0x3de   :  { %1248 = vrcp.f32 %v414_v7 }
 0x3df   :  { %v417_v27 = vpop.xlane.xlu1 %416 }
 0x3e0   :  { %1250 = vrcp.f32 %v417_v27 }
 0x3e1   :  { %v420_v8 = vpop.xlane.xlu0 %419 }
 0x3e2   :  { %1252 = vrcp.f32 %v420_v8 }
 0x3e3   :  { %v423_v9 = vpop.xlane.xlu1 %422 }
 0x3e4   :  { %v1245_v10 = vpop.eup %1244  ;;  %1254 = vrcp.f32 %v423_v9 }
 0x3e5   :  { %v429_v12 = vmul.f32 %v1245_v10, %v1229_v48  ;;  %v586_v23 = vpop.permute.xlu0 %585 }
 0x3e6   :  { %v1247_v11 = vpop.eup %1246 }
 0x3e7   :  { %v431_v13 = vmul.f32 %v1247_v11, %v1231_v50  ;;  %v539_v15 = vpop.permute.xlu1 %538 }
 0x3e8   :  { %v1249_v16 = vpop.eup %1248  ;;  %1136 = vmatpush3.bf16.msra.mxu1 %v539_v15 }
 0x3e9   :  { %v441_v17 = vpack.c.bf16 %v431_v13, %v429_v12  ;;  %1147 = vmatprep.subr.bf16.mxu1 %v1280_v1  ;;  %v433_v20 = vmul.f32 %v1249_v16, %v1233_v52 }
 0x3ea   :  { %v1251_v18 = vpop.eup %1250 }
 0x3eb   :  { %v435_v22 = vmul.f32 %v1251_v18, %v1235_v54  ;;  %1132 = vmatmul.mubr.msk.bf16.vlgmr.msra.gmra.mrb[8].mxu0 %vm351_vm3, %v441_v17 }
 0x3ec   :  { %v1253_v24 = vpop.eup %1252  ;;  %1142 = vmatpush3.bf16.msra.mxu0 %v586_v23  ;;  %1143 = vmatprep.mubr.msk.bf16.mxu0 %vm1281_vm0, %v1280_v1 }
 0x3ed   :  { %v442_v25 = vpack.c.bf16 %v435_v22, %v433_v20  ;;  %1153 = vmatprep.subr.bf16.mxu0 %v1280_v1  ;;  %v437_v30 = vmul.f32 %v1253_v24, %v1237_v56  ;;  %v1045_v24 = vld [vmem:[%s1552_s5] ss:$0 sm:$0xff] }
 0x3ee   :  { %v1255_v29 = vpop.eup %1254 }
 0x3ef   :  { %v439_v31 = vmul.f32 %v1255_v29, %v1239_v58  ;;  %1138 = vmatmul.mubr.msk.bf16.vlgmr.msra.gmra.mrb[16].mxu1 %vm351_vm3, %v442_v25  ;;  %v1219_v58 = vld [vmem:[%s1553_s6 + $0x8] sm:$0xff]  }
 0x3f0   :  { %1148 = vmatpush3.bf16.msra.mxu1 %v645_v26  ;;  %1149 = vmatprep.mubr.msk.bf16.mxu1 %vm1281_vm0, %v1280_v1 }
 0x3f1   :  { %v443_v14 = vpack.c.bf16 %v439_v31, %v437_v30  ;;  %1159 = vmatprep.subr.bf16.mxu1 %v1280_v1 }
 0x3f3   :  { %1144 = vmatmul.mubr.msk.bf16.vlgmr.msra.gmra.mrb[12].mxu0 %vm351_vm3, %v443_v14 }
 0x3f4   :  { %1154 = vmatpush3.bf16.msra.mxu0 %v692_v32  ;;  %1155 = vmatprep.mubr.msk.bf16.mxu0 %vm1281_vm0, %v1280_v1 }
 0x3f5   :  { %1165 = vmatprep.subr.bf16.mxu0 %v1280_v1 }
 0x45d   :  { %v484_v33 = vpop.f32.mrb[12].mxu1 }
 0x45e   :  { %v1127_v35 = vpop.f32.mrb[13].mxu1 }
 0x45f   :  { %v487_v36 = vpop.f32.mrb[14].mxu1 }
 0x460   :  { %v632_v37 = vpack.c.bf16 %v487_v36, %v484_v33  ;;  %v1128_v38 = vpop.f32.mrb[15].mxu1  ;;  %v1222_v36 = vld [vmem:[%s1555_s8 + $0x10] sm:$0xff]  }
 0x462   :  { %1150 = vmatmul.mubr.msk.bf16.vlgmr.msra.gmra.mrb[20].mxu1 %vm135_vm2, %v632_v37  ;;  %v1223_v37 = vld [vmem:[%s1555_s8 + $0x18] sm:$0xff]  }
 0x463   :  { %1160 = vmatpush3.bf16.msra.mxu1 %v739_v39  ;;  %1161 = vmatprep.mubr.msk.bf16.mxu1 %vm1281_vm0, %v1280_v1 }
 0x464   :  { %1171 = vmatprep.subr.bf16.mxu1 %v1280_v1 }
 0x4be   :  { %v531_v40 = vpop.f32.mrb[8].mxu0 }
 0x4bf   :  { %v1133_v42 = vpop.f32.mrb[9].mxu0 }
 0x4c0   :  { %v534_v43 = vpop.f32.mrb[10].mxu0 }
 0x4c1   :  { %v633_v44 = vpack.c.bf16 %v534_v43, %v531_v40  ;;  %v1134_v45 = vpop.f32.mrb[11].mxu0 }
 0x4c2   :  { %v578_v47 = vpop.f32.mrb[16].mxu1 }
 0x4c3   :  { %v1139_v48 = vpop.f32.mrb[17].mxu1  ;;  %1156 = vmatmul.mubr.msk.bf16.vlgmr.msra.gmra.mrb[16].mxu0 %vm135_vm2, %v633_v44 }
 0x4c4   :  { %v581_v49 = vpop.f32.mrb[18].mxu1  ;;  %1166 = vmatpush3.bf16.msra.mxu0 %v786_v46  ;;  %1167 = vmatprep.mubr.msk.bf16.mxu0 %vm1281_vm0, %v1280_v1 }
 0x4c5   :  { %v634_v50 = vpack.c.bf16 %v581_v49, %v578_v47  ;;  %v1140_v51 = vpop.f32.mrb[19].mxu1  ;;  %1179 = vmatprep.subr.bf16.mxu0 %v1280_v1 }
 0x4c6   :  { %v625_v52 = vpop.f32.mrb[12].mxu0 }
 0x4c7   :  { %v1145_v53 = vpop.f32.mrb[13].mxu0  ;;  %1162 = vmatmul.mubr.msk.bf16.vlgmr.msra.gmra.mrb[24].mxu1 %vm135_vm2, %v634_v50 }
 0x4c8   :  { %v628_v54 = vpop.f32.mrb[14].mxu0  ;;  %1175 = vmatprep.mubr.msk.bf16.mxu1 %vm1281_vm0, %v1280_v1  ;;  %1172 = vmatpush3.bf16.msra.mxu1 %v1218_v57 }
 0x4c9   :  { %v635_v55 = vpack.c.bf16 %v628_v54, %v625_v52  ;;  %v1146_v56 = vpop.f32.mrb[15].mxu0  ;;  %1173 = vmatprep.subr.bf16.mxu1 %v1280_v1 }
 0x4cb   :  { %1168 = vmatmul.mubr.msk.bf16.vlgmr.msra.gmra.mrb[20].mxu0 %vm135_vm2, %v635_v55 }
 0x4cc   :  { %1187 = vmatprep.mubr.msk.bf16.mxu0 %vm1281_vm0, %v1280_v1  ;;  %1174 = vmatpush3.bf16.msra.mxu1 %v1219_v58 }
 0x4cd   :  { %1180 = vmatpush3.bf16.msra.mxu0 %v1220_v59 }
 0x4ce   :  { %1181 = vmatprep.subr.bf16.mxu0 %v1280_v1 }
 0x4d1   :  { %1182 = vmatpush3.bf16.msra.mxu0 %v1221_v60 }
 0x4d2   :  { %1183 = vmatprep.subr.bf16.mxu0 %v1280_v1 }
 0x4d5   :  { %1184 = vmatpush3.bf16.msra.mxu0 %v1222_v36 }
 0x4d6   :  { %1185 = vmatprep.subr.bf16.mxu0 %v1280_v1  ;;  %v1050_v1 = vld [vmem:[%s1556_s9] ss:$0 sm:$0xff] }
 0x4d9   :  { %1186 = vmatpush3.bf16.msra.mxu0 %v1223_v37 }
 0x535   :  { %v681_v61 = vpop.f32.mrb[20].mxu1 }
 0x536   :  { %v1151_v62 = vpop.f32.mrb[21].mxu1  ;;  %v829_v5 = vsel %vm63_vm1, %v681_v61, 0.0 }
 0x537   :  { %v684_v63 = vpop.f32.mrb[22].mxu1 }
 0x538   :  { %v1152_v0 = vpop.f32.mrb[23].mxu1  ;;  %v836_v8 = vsel %vm63_vm1, %v684_v63, 0.0 }
 0x596   :  { %v728_v2 = vpop.f32.mrb[16].mxu0 }
 0x597   :  { %v830_v6 = vsel %vm63_vm1, %v728_v2, 0.0  ;;  %v1157_v28 = vpop.f32.mrb[17].mxu0 }
 0x598   :  { %v831_v7 = vadd.f32 %v830_v6, %v829_v5  ;;  %v731_v27 = vpop.f32.mrb[18].mxu0 }
 0x599   :  { %v837_v9 = vsel %vm63_vm1, %v731_v27, 0.0  ;;  %v1158_v10 = vpop.f32.mrb[19].mxu0 }
 0x59a   :  { %v838_v11 = vadd.f32 %v837_v9, %v836_v8  ;;  %v775_v12 = vpop.f32.mrb[24].mxu1 }
 0x59b   :  { %v832_v13 = vsel %vm63_vm1, %v775_v12, 0.0  ;;  %v1163_v15 = vpop.f32.mrb[25].mxu1 }
 0x59c   :  { %v833_v16 = vadd.f32 %v832_v13, %v831_v7  ;;  %v778_v17 = vpop.f32.mrb[26].mxu1 }
 0x59d   :  { %v839_v18 = vsel %vm63_vm1, %v778_v17, 0.0  ;;  %v1164_v19 = vpop.f32.mrb[27].mxu1 }
 0x59e   :  { %v840_v20 = vadd.f32 %v839_v18, %v838_v11  ;;  %v822_v22 = vpop.f32.mrb[20].mxu0 }
 0x59f   :  { %v834_v23 = vsel %vm63_vm1, %v822_v22, 0.0  ;;  %v1169_v25 = vpop.f32.mrb[21].mxu0 }
 0x5a0   :  { %v835_v26 = vadd.f32 %v834_v23, %v833_v16  ;;  %v825_v29 = vpop.f32.mrb[22].mxu0 }
 0x5a1   :  { %v841_v21 = vsel %vm63_vm1, %v825_v29, 0.0  ;;  %v1170_v30 = vpop.f32.mrb[23].mxu0 }
 0x5a2   :  { %v850_v31 = vadd.f32 %v1045_v24, %v835_v26  ;;  %v842_v14 = vadd.f32 %v841_v21, %v840_v20 }
 0x5a4   :  { %v851_v32 = vadd.f32 %v1045_v24, %v842_v14  ;;  %v852_v33 = vadd.f32 %v850_v31, %v1358_v3  ;;  %v1046_v3 = vld [vmem:[%s1554_s7] ss:$0 sm:$0xff]  ;;  %s1287_s7 = smov [#allocation2]  }
 0x5a5   :  { %s1018_s8 = sshll.u32 %s1287_s7, 4  ;;  %s1019_s8 = int_to_ptr.vmem [resolvable:$true] %s1018_s8 }
 0x5a6   :  { %v853_v34 = vadd.f32 %v851_v32, %v1363_v4  ;;  %s1256_s1 = scalar_lea.vmem %s1019_s8, 256  ;;  %p1261_p1 = scmp.lt.s32.totalorder %s1019_s8, %s1019_s8 }
 0x5a7   :  { %p1257_p0 = scmp.ne.s32.totalorder %s1019_s8, %s1256_s1  ;;  %p1262_p2 = scmp.lt.s32.totalorder %s1256_s1, %s1256_s1 }
 0x5a8   :  { %v854_v35 = vpack.c.bf16 %v853_v34, %v852_v33 }
 0x5a9   :  { %p1263_p3 = por %p1262_p2, %p1261_p1 }
 0x5aa   :  { %1176 = vmatmul.mubr.msk.bf16.vlgmr.msra.gmra.mrb[28].mxu1 %vm63_vm1, %v854_v35 }
 0x5ab   :  { %p1264_p4 = pnand %p1263_p3, %p1257_p0 }
 0x67d   :  { %v915_v4 = vpop.f32.mrb[28].mxu1 }
 0x67e   :  { %v916_v38 = vadd.f32 %v1046_v3, %v915_v4  ;;  %v1177_v39 = vpop.f32.mrb[29].mxu1 }
 0x67f   :  { %v918_v40 = vpop.f32.mrb[30].mxu1 }
 0x680   :  { %v919_v41 = vadd.f32 %v1046_v3, %v918_v40  ;;  %v1178_v42 = vpop.f32.mrb[31].mxu1  ;;  %v922_v43 = vmax.f32 %v916_v38, 0.0 }
 0x682   :  { %v923_v44 = vmax.f32 %v919_v41, 0.0 }
 0x684   :  { %v924_v45 = vpack.c.bf16 %v923_v44, %v922_v43 }
 0x686   :  { %1188 = vmatmul.mubr.msk.bf16.vlgmr.msra.gmra.mrb[24].mxu0 %vm964_vm5, %v924_v45 }
 0x759   :  { %v1002_v46 = vpop.f32.mrb[24].mxu0 }
 0x75a   :  { %v1003_v47 = vadd.f32 %v1050_v1, %v1002_v46  ;;  %v1189_v48 = vpop.f32.mrb[25].mxu0 }
 0x75b   :  { %v1005_v49 = vpop.f32.mrb[26].mxu0 }
 0x75c   :  { %v1009_v50 = vadd.f32 %v1003_v47, %v852_v33  ;;  %v1006_v51 = vadd.f32 %v1050_v1, %v1005_v49  ;;  %v1190_v52 = vpop.f32.mrb[27].mxu0 }
 0x75e   :  { %1011 = vst.msk [vmem:[#allocation2] sm:$0xff] %vm63_vm1, %v1009_v50  ;;  %v1010_v53 = vadd.f32 %v1006_v51, %v853_v34 }
 0x760   :  { %1012 = vst.msk [vmem:[#allocation2 + $0x8] sm:$0xff] %vm63_vm1, %v1010_v53 }
 0x761   :  { %1267 = shalt.err (!%p1264_p4)
}
 0x762   :  { %s1268_s29 = scalar_lea.hbm %s1557_s10, 256 }
 0x763   :  { %p1269_p5 = scmp.ne.s32.totalorder %s1557_s10, %s1268_s29  ;;  %p1272_p6 = scmp.lt.u32.totalorder %s1268_s29, %s1557_s10 }
 0x765   :  { %p1274_p7 = pnand %p1272_p6, %p1269_p5 }
 0x767   :  { %1277 = shalt.err (!%p1274_p7)
}
 0x768   :  { %s1288_s14 = smov 128   ;;  %s1289_s15 = smov 8  }
 0x769   :  { %1024 = dma.vmem_to_hbm [thread:$0]  %s1019_s8, 256, %s1557_s10, [#allocation3], %s1288_s14, %s1288_s14, %s1289_s15  }
 0x76a   :  { %1278 = dma.done.wait [#allocation3], 256  }
 0x76b   :  { %1279 = vsyncadd [#allocation3], 4294967040 }
 0x76c   :  { %1028 = vsyncpa [#allocation3], 1 }

</bundles_post_ra>
